<compile_context>
chip_gen: v7x
topology: tpu7x:2x2x1
jax: 0.10.0
libtpu: 0.0.40
codegen_flags: <defaults>
</compile_context>

<pallas_src>
import numpy as np
import jax
import jax.numpy as jnp
from jax.experimental import pallas as pl
from jax.experimental.pallas import tpu as pltpu

# ---- model hyper-parameters (small but consistent with the module) ----
N_GRAM    = 4             # n -> conv kernel size = n - 1 = 3
K         = N_GRAM - 1    # conv kernel width
EMB       = 300           # embedding dim (fixed by Conv1d(300, ...))
FILTERS   = 50            # num_filters
HIDDEN    = 32            # hidden_size (small)
VOCAB     = 64            # vocab_length (small)
BATCH     = 2
SEQ       = 8
L_OUT     = SEQ - K + 1   # conv output length = 6
ROWS      = BATCH * L_OUT # 12 valid output rows
ROWS_PAD  = 16            # padded to 8-sublane multiple
TOK_PAD   = BATCH * SEQ   # 16 tokens (already 8-aligned)
EMB_PAD   = 384           # 300 padded to 3*128 lanes
VOCAB_PAD = 128           # 64 padded to 128 lanes (lane-dense output stores)


def nnlm_cnn_kernel(ids_ref, wv_ref, wfold_ref, bfold_ref, p_ref,
                    w2_ref, b2_ref, w3_ref, b3_ref, out_ref):
    """Single step processes the whole (tiny) batch; everything lives in VMEM.

    ids_ref:   (TOK_PAD, 1)  int32 token ids (row r = b*SEQ + s)
    wv_ref:    (VOCAB_PAD, EMB_PAD)     zero-padded embedding table
    wfold_ref: (K, EMB_PAD, HIDDEN)     Conv1d tap k folded into Linear1
    bfold_ref: (1, HIDDEN)              bconv @ w1.T + b1
    p_ref:     (K, ROWS_PAD, TOK_PAD)   constant window-selection matrices
    w2_ref:    (HIDDEN, HIDDEN), b2_ref: (1, HIDDEN)
    w3_ref:    (HIDDEN, VOCAB_PAD), b3_ref: (1, VOCAB_PAD)  (pad bias = -1e30)
    out_ref:   (ROWS_PAD, VOCAB_PAD)
    """
    # ---- embedding gather as a one-hot matmul (MXU, no scalar loads/stores) --
    ids = ids_ref[...]                                            # (16, 1) int32
    lane = jax.lax.broadcasted_iota(jnp.int32, (TOK_PAD, VOCAB_PAD), 1)
    onehot = (ids == lane).astype(jnp.float32)                    # (16, 128)
    # NOTE: token ids >= VOCAB would select a zero row (no OOB read possible).
    emb = jnp.dot(onehot, wv_ref[...],
                  preferred_element_type=jnp.float32)             # (16, 384)

    # ---- Conv1d + Linear1 (exact fold): sum_k P_k @ (E @ wfold[k]) ----------
    acc = jnp.zeros((ROWS_PAD, HIDDEN), jnp.float32)
    for k in range(K):                                            # K = 3, unrolled
        ew = jnp.dot(emb, wfold_ref[k],
                     preferred_element_type=jnp.float32)          # (16, H)
        acc = acc + jnp.dot(p_ref[k], ew,
                            preferred_element_type=jnp.float32)   # (16, H)
    h = jnp.tanh(acc + bfold_ref[...])

    # ---- MLP head -----------------------------------------------------------
    h = jnp.tanh(jnp.dot(h, w2_ref[...],
                         preferred_element_type=jnp.float32) + b2_ref[...])
    logits = jnp.dot(h, w3_ref[...],
                     preferred_element_type=jnp.float32) + b3_ref[...]

    # ---- softmax over 128 lanes; padded logits are -1e30 -> exp == 0 --------
    m = jnp.max(logits, axis=-1, keepdims=True)
    e = jnp.exp(logits - m)
    d = jnp.sum(e, axis=-1, keepdims=True)
    r = pl.reciprocal(d, approx=True)                             # EUP slot
    r = r * (2.0 - d * r)                                         # one Newton step
    out_ref[...] = (e * r).astype(out_ref.dtype)                  # full-lane stores


def prepare_params(params):
    """One-time weight preparation (hoisted out of the per-call path)."""
    wconv, bconv = params["wconv"], params["bconv"]               # (F,E,K), (F,)
    w1, b1 = params["w1"], params["b1"]                           # (H,F), (H,)
    w2, b2 = params["w2"], params["b2"]                           # (H,H), (H,)
    w3, b3 = params["w3"], params["b3"]                           # (V,H), (V,)

    # exact algebraic fold of Conv1d tap k into Linear1: (E, H) per tap
    wfold = jnp.stack([wconv[:, :, k].T @ w1.T for k in range(K)], axis=0)  # (K,E,H)
    wfold = jnp.pad(wfold, ((0, 0), (0, EMB_PAD - EMB), (0, 0)))            # zero-pad E
    bfold = (bconv @ w1.T + b1).reshape(1, HIDDEN)

    wv_pad = jnp.pad(params["word_vecs"],
                     ((0, VOCAB_PAD - VOCAB), (0, EMB_PAD - EMB)))          # (128, 384)

    # constant window-selection matrices: row r = b*L_OUT + t picks token b*SEQ+t+k
    P = np.zeros((K, ROWS_PAD, TOK_PAD), np.float32)
    for r in range(ROWS):
        b, t = divmod(r, L_OUT)
        for k in range(K):
            P[k, r, b * SEQ + t + k] = 1.0

    w3k = jnp.pad(w3.T, ((0, 0), (0, VOCAB_PAD - VOCAB)))                   # (H, 128)
    b3k = jnp.concatenate(
        [b3, jnp.full((VOCAB_PAD - VOCAB,), -1e30, b3.dtype)]).reshape(1, VOCAB_PAD)

    return {
        "wv": wv_pad, "wfold": wfold, "bfold": bfold, "P": jnp.asarray(P),
        "w2": w2.T, "b2": b2.reshape(1, HIDDEN), "w3": w3k, "b3": b3k,
    }


def nnlm_cnn_forward(tokens, prep):
    """tokens: (BATCH, SEQ) int tokens. Returns (BATCH * L_OUT, VOCAB) float32."""
    ids = tokens.reshape(TOK_PAD, 1).astype(jnp.int32)

    # TODO(synk): dropout on embeddings omitted (eval-mode identity).
    def full(shape):
        nd = len(shape)
        return pl.BlockSpec(shape, lambda i, _nd=nd: (0,) * _nd)

    out = pl.pallas_call(
        nnlm_cnn_kernel,
        out_shape=jax.ShapeDtypeStruct((ROWS_PAD, VOCAB_PAD), jnp.float32),
        grid=(1,),                                  # single step: everything fits VMEM
        in_specs=[
            full((TOK_PAD, 1)),                     # token ids
            full((VOCAB_PAD, EMB_PAD)),             # embedding table (padded)
            full((K, EMB_PAD, HIDDEN)),             # folded conv+linear1 taps
            full((1, HIDDEN)),                      # folded bias
            full((K, ROWS_PAD, TOK_PAD)),           # window-selection matrices
            full((HIDDEN, HIDDEN)), full((1, HIDDEN)),        # linear 2
            full((HIDDEN, VOCAB_PAD)), full((1, VOCAB_PAD)),  # linear 3 (padded)
        ],
        out_specs=full((ROWS_PAD, VOCAB_PAD)),
        compiler_params=pltpu.CompilerParams(
            dimension_semantics=("arbitrary",)),
    )(ids, prep["wv"], prep["wfold"], prep["bfold"], prep["P"],
      prep["w2"], prep["b2"], prep["w3"], prep["b3"])

    return out[:ROWS, :VOCAB]   # (B*L_OUT, VOCAB) — already flatten(0,1) row order


def reference_forward(tokens, params):
    """Pure-JAX reference mirroring the PyTorch semantics (PyTorch weight layouts)."""
    emb = params["word_vecs"][tokens]                             # (B, S, E)
    conv = jnp.stack([
        sum(emb[:, t + k, :] @ params["wconv"][:, :, k].T for k in range(K))
        for t in range(L_OUT)
    ], axis=1) + params["bconv"][None, None, :]                   # (B, L, F)
    h = jnp.tanh(conv @ params["w1"].T + params["b1"])
    h = jnp.tanh(h @ params["w2"].T + params["b2"])
    logits = h @ params["w3"].T + params["b3"]
    probs = jax.nn.softmax(logits, axis=-1)
    return probs.reshape(ROWS, VOCAB)


def make_params(key):
    ks = jax.random.split(key, 9)
    s = 0.05
    return {
        "word_vecs": s * jax.random.normal(ks[0], (VOCAB, EMB), jnp.float32),
        # PyTorch layouts: Conv1d weight (F, E, K); Linear weight (out, in)
        "wconv": s * jax.random.normal(ks[1], (FILTERS, EMB, K), jnp.float32),
        "bconv": s * jax.random.normal(ks[2], (FILTERS,), jnp.float32),
        "w1": s * jax.random.normal(ks[3], (HIDDEN, FILTERS), jnp.float32),
        "b1": s * jax.random.normal(ks[4], (HIDDEN,), jnp.float32),
        "w2": s * jax.random.normal(ks[5], (HIDDEN, HIDDEN), jnp.float32),
        "b2": s * jax.random.normal(ks[6], (HIDDEN,), jnp.float32),
        "w3": s * jax.random.normal(ks[7], (VOCAB, HIDDEN), jnp.float32),
        "b3": s * jax.random.normal(ks[8], (VOCAB,), jnp.float32),
    }


if __name__ == "__main__":
    key = jax.random.PRNGKey(0)
    pkey, tkey = jax.random.split(key)
    params = make_params(pkey)
    tokens = jax.random.randint(tkey, (BATCH, SEQ), 0, VOCAB, dtype=jnp.int32)

    # one-time weight prep (hoisted out of the per-call path)
    prepared = jax.tree_util.tree_map(jax.block_until_ready,
                                      prepare_params(params))

    fwd = jax.jit(nnlm_cnn_forward)
    out = jax.block_until_ready(fwd(tokens, prepared))

    ref = reference_forward(tokens, params)
    assert out.shape == (ROWS, VOCAB)
    err = float(jnp.max(jnp.abs(out - ref)))
    assert jnp.allclose(out, ref, atol=2e-5, rtol=1e-5), f"mismatch vs reference (max err {err})"
    assert jnp.allclose(out.sum(axis=-1), 1.0, atol=1e-5), "softmax rows must sum to 1"

    print("KERNEL_OK")
</pallas_src>

<mosaic_0001>
module attributes {stable_mosaic.version = 11 : i64} {
  func.func @nnlm_cnn_kernel(%arg0: i32, %arg1: memref<16x1xi32, #tpu.memory_space<vmem>>, %arg2: memref<128x384xf32, #tpu.memory_space<vmem>>, %arg3: memref<3x384x32xf32, #tpu.memory_space<vmem>>, %arg4: memref<1x32xf32, #tpu.memory_space<vmem>>, %arg5: memref<3x16x16xf32, #tpu.memory_space<vmem>>, %arg6: memref<32x32xf32, #tpu.memory_space<vmem>>, %arg7: memref<1x32xf32, #tpu.memory_space<vmem>>, %arg8: memref<32x128xf32, #tpu.memory_space<vmem>>, %arg9: memref<1x128xf32, #tpu.memory_space<vmem>>, %arg10: memref<16x128xf32, #tpu.memory_space<vmem>>) attributes {dimension_semantics = [#tpu.dimension_semantics<arbitrary>], iteration_bounds = array<i64: 1>, scalar_prefetch = 0 : i64, scratch_operands = 0 : i64, tpu.core_type = #tpu.core_type<tc>, window_params = [{pipeline_mode = #tpu.pipeline_mode<synchronous>, transform_indices = @transform_0, window_bounds = array<i64: 16, 1>}, {pipeline_mode = #tpu.pipeline_mode<synchronous>, transform_indices = @transform_1, window_bounds = array<i64: 128, 384>}, {pipeline_mode = #tpu.pipeline_mode<synchronous>, transform_indices = @transform_2, window_bounds = array<i64: 3, 384, 32>}, {pipeline_mode = #tpu.pipeline_mode<synchronous>, transform_indices = @transform_3, window_bounds = array<i64: 1, 32>}, {pipeline_mode = #tpu.pipeline_mode<synchronous>, transform_indices = @transform_4, window_bounds = array<i64: 3, 16, 16>}, {pipeline_mode = #tpu.pipeline_mode<synchronous>, transform_indices = @transform_5, window_bounds = array<i64: 32, 32>}, {pipeline_mode = #tpu.pipeline_mode<synchronous>, transform_indices = @transform_6, window_bounds = array<i64: 1, 32>}, {pipeline_mode = #tpu.pipeline_mode<synchronous>, transform_indices = @transform_7, window_bounds = array<i64: 32, 128>}, {pipeline_mode = #tpu.pipeline_mode<synchronous>, transform_indices = @transform_8, window_bounds = array<i64: 1, 128>}, {pipeline_mode = #tpu.pipeline_mode<synchronous>, transform_indices = @transform_9, window_bounds = array<i64: 16, 128>}]} {
    %c0 = arith.constant 0 : index
    %c0_0 = arith.constant 0 : index
    %0 = vector.load %arg1[%c0, %c0_0] : memref<16x1xi32, #tpu.memory_space<vmem>>, vector<16x1xi32>
    %1 = tpu.iota {dimensions = array<i32: 1>} : vector<16x128xi32>
    %2 = vector.broadcast %0 : vector<16x1xi32> to vector<16x128xi32>
    %3 = arith.cmpi eq, %2, %1 : vector<16x128xi32>
    %4 = arith.extui %3 : vector<16x128xi1> to vector<16x128xi32>
    %5 = arith.sitofp %4 : vector<16x128xi32> to vector<16x128xf32>
    %c0_1 = arith.constant 0 : index
    %c0_2 = arith.constant 0 : index
    %6 = vector.load %arg2[%c0_1, %c0_2] : memref<128x384xf32, #tpu.memory_space<vmem>>, vector<128x384xf32>
    %cst = arith.constant dense<0.000000e+00> : vector<16x384xf32>
    %7 = tpu.matmul %5, %6, %cst {dimension_numbers = #tpu.dot_dimension_numbers<[1], [0], [0], [1], [0, 0, 1, 1], [], []>} : vector<16x128xf32>, vector<128x384xf32>, vector<16x384xf32> -> vector<16x384xf32>
    %cst_3 = arith.constant 0.000000e+00 : f32
    %8 = vector.broadcast %cst_3 : f32 to vector<16x32xf32>
    %c0_4 = arith.constant 0 : index
    %c0_5 = arith.constant 0 : index
    %c0_6 = arith.constant 0 : index
    %9 = vector.load %arg3[%c0_4, %c0_5, %c0_6] : memref<3x384x32xf32, #tpu.memory_space<vmem>>, vector<1x384x32xf32>
    %10 = vector.shape_cast %9 : vector<1x384x32xf32> to vector<384x32xf32>
    %cst_7 = arith.constant dense<0.000000e+00> : vector<16x32xf32>
    %11 = tpu.matmul %7, %10, %cst_7 {dimension_numbers = #tpu.dot_dimension_numbers<[1], [0], [0], [1], [0, 0, 1, 1], [], []>} : vector<16x384xf32>, vector<384x32xf32>, vector<16x32xf32> -> vector<16x32xf32>
    %c0_8 = arith.constant 0 : index
    %c0_9 = arith.constant 0 : index
    %c0_10 = arith.constant 0 : index
    %12 = vector.load %arg5[%c0_8, %c0_9, %c0_10] : memref<3x16x16xf32, #tpu.memory_space<vmem>>, vector<1x16x16xf32>
    %13 = vector.shape_cast %12 : vector<1x16x16xf32> to vector<16x16xf32>
    %cst_11 = arith.constant dense<0.000000e+00> : vector<16x32xf32>
    %14 = tpu.matmul %13, %11, %cst_11 {dimension_numbers = #tpu.dot_dimension_numbers<[1], [0], [0], [1], [0, 0, 1, 1], [], []>} : vector<16x16xf32>, vector<16x32xf32>, vector<16x32xf32> -> vector<16x32xf32>
    %15 = arith.addf %8, %14 : vector<16x32xf32>
    %c1 = arith.constant 1 : index
    %c0_12 = arith.constant 0 : index
    %c0_13 = arith.constant 0 : index
    %16 = vector.load %arg3[%c1, %c0_12, %c0_13] : memref<3x384x32xf32, #tpu.memory_space<vmem>>, vector<1x384x32xf32>
    %17 = vector.shape_cast %16 : vector<1x384x32xf32> to vector<384x32xf32>
    %cst_14 = arith.constant dense<0.000000e+00> : vector<16x32xf32>
    %18 = tpu.matmul %7, %17, %cst_14 {dimension_numbers = #tpu.dot_dimension_numbers<[1], [0], [0], [1], [0, 0, 1, 1], [], []>} : vector<16x384xf32>, vector<384x32xf32>, vector<16x32xf32> -> vector<16x32xf32>
    %c1_15 = arith.constant 1 : index
    %c0_16 = arith.constant 0 : index
    %c0_17 = arith.constant 0 : index
    %19 = vector.load %arg5[%c1_15, %c0_16, %c0_17] : memref<3x16x16xf32, #tpu.memory_space<vmem>>, vector<1x16x16xf32>
    %20 = vector.shape_cast %19 : vector<1x16x16xf32> to vector<16x16xf32>
    %cst_18 = arith.constant dense<0.000000e+00> : vector<16x32xf32>
    %21 = tpu.matmul %20, %18, %cst_18 {dimension_numbers = #tpu.dot_dimension_numbers<[1], [0], [0], [1], [0, 0, 1, 1], [], []>} : vector<16x16xf32>, vector<16x32xf32>, vector<16x32xf32> -> vector<16x32xf32>
    %22 = arith.addf %15, %21 : vector<16x32xf32>
    %c2 = arith.constant 2 : index
    %c0_19 = arith.constant 0 : index
    %c0_20 = arith.constant 0 : index
    %23 = vector.load %arg3[%c2, %c0_19, %c0_20] : memref<3x384x32xf32, #tpu.memory_space<vmem>>, vector<1x384x32xf32>
    %24 = vector.shape_cast %23 : vector<1x384x32xf32> to vector<384x32xf32>
    %cst_21 = arith.constant dense<0.000000e+00> : vector<16x32xf32>
    %25 = tpu.matmul %7, %24, %cst_21 {dimension_numbers = #tpu.dot_dimension_numbers<[1], [0], [0], [1], [0, 0, 1, 1], [], []>} : vector<16x384xf32>, vector<384x32xf32>, vector<16x32xf32> -> vector<16x32xf32>
    %c2_22 = arith.constant 2 : index
    %c0_23 = arith.constant 0 : index
    %c0_24 = arith.constant 0 : index
    %26 = vector.load %arg5[%c2_22, %c0_23, %c0_24] : memref<3x16x16xf32, #tpu.memory_space<vmem>>, vector<1x16x16xf32>
    %27 = vector.shape_cast %26 : vector<1x16x16xf32> to vector<16x16xf32>
    %cst_25 = arith.constant dense<0.000000e+00> : vector<16x32xf32>
    %28 = tpu.matmul %27, %25, %cst_25 {dimension_numbers = #tpu.dot_dimension_numbers<[1], [0], [0], [1], [0, 0, 1, 1], [], []>} : vector<16x16xf32>, vector<16x32xf32>, vector<16x32xf32> -> vector<16x32xf32>
    %29 = arith.addf %22, %28 : vector<16x32xf32>
    %c0_26 = arith.constant 0 : index
    %c0_27 = arith.constant 0 : index
    %30 = vector.load %arg4[%c0_26, %c0_27] : memref<1x32xf32, #tpu.memory_space<vmem>>, vector<1x32xf32>
    %31 = vector.broadcast %30 : vector<1x32xf32> to vector<16x32xf32>
    %32 = arith.addf %29, %31 : vector<16x32xf32>
    %33 = math.tanh %32 : vector<16x32xf32>
    %c0_28 = arith.constant 0 : index
    %c0_29 = arith.constant 0 : index
    %34 = vector.load %arg6[%c0_28, %c0_29] : memref<32x32xf32, #tpu.memory_space<vmem>>, vector<32x32xf32>
    %cst_30 = arith.constant dense<0.000000e+00> : vector<16x32xf32>
    %35 = tpu.matmul %33, %34, %cst_30 {dimension_numbers = #tpu.dot_dimension_numbers<[1], [0], [0], [1], [0, 0, 1, 1], [], []>} : vector<16x32xf32>, vector<32x32xf32>, vector<16x32xf32> -> vector<16x32xf32>
    %c0_31 = arith.constant 0 : index
    %c0_32 = arith.constant 0 : index
    %36 = vector.load %arg7[%c0_31, %c0_32] : memref<1x32xf32, #tpu.memory_space<vmem>>, vector<1x32xf32>
    %37 = vector.broadcast %36 : vector<1x32xf32> to vector<16x32xf32>
    %38 = arith.addf %35, %37 : vector<16x32xf32>
    %39 = math.tanh %38 : vector<16x32xf32>
    %c0_33 = arith.constant 0 : index
    %c0_34 = arith.constant 0 : index
    %40 = vector.load %arg8[%c0_33, %c0_34] : memref<32x128xf32, #tpu.memory_space<vmem>>, vector<32x128xf32>
    %cst_35 = arith.constant dense<0.000000e+00> : vector<16x128xf32>
    %41 = tpu.matmul %39, %40, %cst_35 {dimension_numbers = #tpu.dot_dimension_numbers<[1], [0], [0], [1], [0, 0, 1, 1], [], []>} : vector<16x32xf32>, vector<32x128xf32>, vector<16x128xf32> -> vector<16x128xf32>
    %c0_36 = arith.constant 0 : index
    %c0_37 = arith.constant 0 : index
    %42 = vector.load %arg9[%c0_36, %c0_37] : memref<1x128xf32, #tpu.memory_space<vmem>>, vector<1x128xf32>
    %43 = vector.broadcast %42 : vector<1x128xf32> to vector<16x128xf32>
    %44 = arith.addf %41, %43 : vector<16x128xf32>
    %cst_38 = arith.constant dense<0xFF800000> : vector<16xf32>
    %45 = vector.multi_reduction <maximumf>, %44, %cst_38 [1] : vector<16x128xf32> to vector<16xf32>
    %46 = vector.shape_cast %45 : vector<16xf32> to vector<16x1xf32>
    %47 = vector.broadcast %46 : vector<16x1xf32> to vector<16x128xf32>
    %48 = arith.subf %44, %47 : vector<16x128xf32>
    %49 = math.exp %48 : vector<16x128xf32>
    %cst_39 = arith.constant dense<0.000000e+00> : vector<16xf32>
    %50 = vector.multi_reduction <add>, %49, %cst_39 [1] : vector<16x128xf32> to vector<16xf32>
    %51 = vector.shape_cast %50 : vector<16xf32> to vector<16x1xf32>
    %52 = tpu.reciprocal %51 {approx = true} : vector<16x1xf32> -> vector<16x1xf32>
    %53 = arith.mulf %51, %52 : vector<16x1xf32>
    %cst_40 = arith.constant 2.000000e+00 : f32
    %54 = vector.broadcast %cst_40 : f32 to vector<16x1xf32>
    %55 = arith.subf %54, %53 : vector<16x1xf32>
    %56 = arith.mulf %52, %55 : vector<16x1xf32>
    %57 = vector.broadcast %56 : vector<16x1xf32> to vector<16x128xf32>
    %58 = arith.mulf %49, %57 : vector<16x128xf32>
    %c0_41 = arith.constant 0 : index
    %c0_42 = arith.constant 0 : index
    %59 = vector.load %arg10[%c0_41, %c0_42] : memref<16x128xf32, #tpu.memory_space<vmem>>, vector<16x128xf32>
    tpu.vector_store %arg10[%c0_41, %c0_42], %58 {strides = array<i32>} : memref<16x128xf32, #tpu.memory_space<vmem>>, vector<16x128xf32>,
    return
  }
  func.func @transform_0(%arg0: i32) -> (i32, i32) {
    %c0_i32 = arith.constant 0 : i32
    %c0_i32_0 = arith.constant 0 : i32
    %c0_i32_1 = arith.constant 0 : i32
    return %c0_i32, %c0_i32_0 : i32, i32
  }
  func.func @transform_1(%arg0: i32) -> (i32, i32) {
    %c0_i32 = arith.constant 0 : i32
    %c0_i32_0 = arith.constant 0 : i32
    %c0_i32_1 = arith.constant 0 : i32
    return %c0_i32, %c0_i32_0 : i32, i32
  }
  func.func @transform_2(%arg0: i32) -> (i32, i32, i32) {
    %c0_i32 = arith.constant 0 : i32
    %c0_i32_0 = arith.constant 0 : i32
    %c0_i32_1 = arith.constant 0 : i32
    %c0_i32_2 = arith.constant 0 : i32
    return %c0_i32, %c0_i32_0, %c0_i32_1 : i32, i32, i32
  }
  func.func @transform_3(%arg0: i32) -> (i32, i32) {
    %c0_i32 = arith.constant 0 : i32
    %c0_i32_0 = arith.constant 0 : i32
    %c0_i32_1 = arith.constant 0 : i32
    return %c0_i32, %c0_i32_0 : i32, i32
  }
  func.func @transform_4(%arg0: i32) -> (i32, i32, i32) {
    %c0_i32 = arith.constant 0 : i32
    %c0_i32_0 = arith.constant 0 : i32
    %c0_i32_1 = arith.constant 0 : i32
    %c0_i32_2 = arith.constant 0 : i32
    return %c0_i32, %c0_i32_0, %c0_i32_1 : i32, i32, i32
  }
  func.func @transform_5(%arg0: i32) -> (i32, i32) {
    %c0_i32 = arith.constant 0 : i32
    %c0_i32_0 = arith.constant 0 : i32
    %c0_i32_1 = arith.constant 0 : i32
    return %c0_i32, %c0_i32_0 : i32, i32
  }
  func.func @transform_6(%arg0: i32) -> (i32, i32) {
    %c0_i32 = arith.constant 0 : i32
    %c0_i32_0 = arith.constant 0 : i32
    %c0_i32_1 = arith.constant 0 : i32
    return %c0_i32, %c0_i32_0 : i32, i32
  }
  func.func @transform_7(%arg0: i32) -> (i32, i32) {
    %c0_i32 = arith.constant 0 : i32
    %c0_i32_0 = arith.constant 0 : i32
    %c0_i32_1 = arith.constant 0 : i32
    return %c0_i32, %c0_i32_0 : i32, i32
  }
  func.func @transform_8(%arg0: i32) -> (i32, i32) {
    %c0_i32 = arith.constant 0 : i32
    %c0_i32_0 = arith.constant 0 : i32
    %c0_i32_1 = arith.constant 0 : i32
    return %c0_i32, %c0_i32_0 : i32, i32
  }
  func.func @transform_9(%arg0: i32) -> (i32, i32) {
    %c0_i32 = arith.constant 0 : i32
    %c0_i32_0 = arith.constant 0 : i32
    %c0_i32_1 = arith.constant 0 : i32
    return %c0_i32, %c0_i32_0 : i32, i32
  }
}

</mosaic_0001>

<bundles_post_ra>
// kernel: nnlm_cnn_forward.1
= control target key start
LH: loop header
LB: loop body
LE: loop exit
PB: predicated region body
PF: predicated region fallthrough
CT: control target
= control target key end

     0   :  { %v2186_v2 = vmov 0   ;;  %v2187_v12 = vmov 0.0   ;;  %s2929_s0 = inlined_call_operand.vmem [shape: s32[16,1], index: 0, kind: input, shape index: {}]   ;;  %s2930_s1 = inlined_call_operand.vmem [shape: f32[128,384], index: 1, kind: input, shape index: {}]   ;;  %s2931_s2 = inlined_call_operand.vmem [shape: f32[3,384,32], index: 2, kind: input, shape index: {}]   ;;  %s2932_s3 = inlined_call_operand.vmem [shape: f32[1,32], index: 3, kind: input, shape index: {}]   ;;  %s2933_s4 = inlined_call_operand.vmem [shape: f32[3,16,16], index: 4, kind: input, shape index: {}]   ;;  %s2934_s5 = inlined_call_operand.vmem [shape: f32[32,32], index: 5, kind: input, shape index: {}]   ;;  %s2935_s6 = inlined_call_operand.vmem [shape: f32[1,32], index: 6, kind: input, shape index: {}]   ;;  %s2936_s7 = inlined_call_operand.vmem [shape: f32[32,128], index: 7, kind: input, shape index: {}]   ;;  %s2937_s8 = inlined_call_operand.vmem [shape: f32[1,128], index: 8, kind: input, shape index: {}]   ;;  %s2938_s9 = inlined_call_operand.hbm [shape: f32[16,128], index: 9, kind: output, shape index: {}]  }
   0x1   :  { %v33_v0 = vld [vmem:[%s2929_s0] sm:$0xff]  ;;  %v50_v1 = vld [vmem:[%s2930_s1 + $0x8] sm:$0xff]  ;;  %2145 = vset.pattern.permute.xlu0 %v2186_v2  ;;  %v52_v6 = vld [vmem:[%s2930_s1 + $0x18] sm:$0xff]  ;;  %161 = vmatprep.mubr.f32.mxu0 %v2187_v12 }
   0x2   :  { %v34_v3 = vld [vmem:[%s2929_s0 + $0x8] sm:$0xff]  ;;  %v53_v4 = vld [vmem:[%s2930_s1 + $0x20] sm:$0xff]  ;;  %38 = vperm.xlu0 %2145, %v33_v0   ;;  %v56_v9 = vld [vmem:[%s2930_s1 + $0x38] sm:$0xff] }
   0x3   :  { %v49_v5 = vld [vmem:[%s2930_s1] sm:$0xff]  ;;  %v1851_v7 = vpack.c.bf16 %v53_v4, %v50_v1  ;;  %v59_v10 = vld [vmem:[%s2930_s1 + $0x50] sm:$0xff]  ;;  %v54_v14 = vld [vmem:[%s2930_s1 + $0x28] sm:$0xff] }
   0x4   :  { %v1853_v8 = vpack.c.bf16 %v52_v6, %v49_v5  ;;  %v51_v11 = vld [vmem:[%s2930_s1 + $0x10] sm:$0xff]  ;;  %v1855_v13 = vpack.c.bf16 %v59_v10, %v56_v9  ;;  %v58_v16 = vld [vmem:[%s2930_s1 + $0x48] sm:$0xff]  ;;  %v65_v19 = vld [vmem:[%s2930_s1 + $0x80] sm:$0xff] }
   0x5   :  { %v55_v15 = vld [vmem:[%s2930_s1 + $0x30] sm:$0xff]  ;;  %1852 = vmatprep.subr.bf16.mxu0 %v1851_v7  ;;  %v1883_v17 = vpack.c.bf16 %v54_v14, %v51_v11  ;;  %v62_v18 = vld [vmem:[%s2930_s1 + $0x68] sm:$0xff]  ;;  %v57_v20 = vld [vmem:[%s2930_s1 + $0x40] sm:$0xff] }
   0x6   :  { %1854 = vmatpush1.bf16.msra.mxu0 %v1853_v8  ;;  %v1857_v21 = vpack.c.bf16 %v58_v16, %v55_v15  ;;  %v60_v22 = vld [vmem:[%s2930_s1 + $0x58] sm:$0xff]  ;;  %41 = vperm.xlu0 %2145, %v34_v3   ;;  %v1859_v23 = vpack.c.bf16 %v65_v19, %v62_v18  ;;  %v61_v25 = vld [vmem:[%s2930_s1 + $0x60] sm:$0xff]  ;;  %v63_v27 = vld [vmem:[%s2930_s1 + $0x70] sm:$0xff] }
   0x7   :  { %1856 = vmatprep.subr.bf16.mxu0 %v1855_v13  ;;  %v1887_v24 = vpack.c.bf16 %v60_v22, %v57_v20  ;;  %v64_v26 = vld [vmem:[%s2930_s1 + $0x78] sm:$0xff]  ;;  %1884 = vmatprep.subr.bf16.mxu1 %v1883_v17  ;;  %v71_v29 = vld [vmem:[%s2930_s1 + $0xb0] sm:$0xff]  ;;  %v66_v30 = vld [vmem:[%s2930_s1 + $0x88] sm:$0xff] }
   0x8   :  { %v68_v28 = vld [vmem:[%s2930_s1 + $0x98] sm:$0xff]  ;;  %1886 = vmatpush3.bf16.msra.mxu1 %v1883_v17  ;;  %v1861_v31 = vpack.c.bf16 %v64_v26, %v61_v25  ;;  %v1891_v32 = vpack.c.bf16 %v66_v30, %v63_v27  ;;  %v67_v33 = vld [vmem:[%s2930_s1 + $0x90] sm:$0xff]  ;;  %v70_v35 = vld [vmem:[%s2930_s1 + $0xa8] sm:$0xff] }
   0x9   :  { %1888 = vmatprep.subr.bf16.mxu1 %v1887_v24  ;;  %v1863_v34 = vpack.c.bf16 %v71_v29, %v68_v28  ;;  %v69_v36 = vld [vmem:[%s2930_s1 + $0xa0] sm:$0xff]  ;;  %v72_v37 = vld [vmem:[%s2930_s1 + $0xb8] sm:$0xff]  ;;  %v74_v38 = vld [vmem:[%s2930_s1 + $0xc8] sm:$0xff]  ;;  %v1865_v40 = vpack.c.bf16 %v70_v35, %v67_v33 }
   0xa   :  { %1858 = vmatpush1.bf16.msra.mxu0 %v1857_v21  ;;  %v77_v39 = vld [vmem:[%s2930_s1 + $0xe0] sm:$0xff]  ;;  %v1895_v41 = vpack.c.bf16 %v72_v37, %v69_v36  ;;  %v76_v44 = vld [vmem:[%s2930_s1 + $0xd8] sm:$0xff]  ;;  %v75_v45 = vld [vmem:[%s2930_s1 + $0xd0] sm:$0xff] }
   0xb   :  { %1860 = vmatprep.subr.bf16.mxu0 %v1859_v23  ;;  %v73_v42 = vld [vmem:[%s2930_s1 + $0xc0] sm:$0xff]  ;;  %v1867_v43 = vpack.c.bf16 %v77_v39, %v74_v38  ;;  %v78_v46 = vld [vmem:[%s2930_s1 + $0xe8] sm:$0xff]  ;;  %v80_v47 = vld [vmem:[%s2930_s1 + $0xf8] sm:$0xff] }
   0xc   :  { %1890 = vmatpush3.bf16.msra.mxu1 %v1887_v24  ;;  %v83_v48 = vld [vmem:[%s2930_s1 + $0x110] sm:$0xff]  ;;  %v1869_v49 = vpack.c.bf16 %v76_v44, %v73_v42  ;;  %v1899_v50 = vpack.c.bf16 %v78_v46, %v75_v45  ;;  %v82_v53 = vld [vmem:[%s2930_s1 + $0x108] sm:$0xff]  ;;  %v81_v54 = vld [vmem:[%s2930_s1 + $0x100] sm:$0xff] }
   0xd   :  { %1892 = vmatprep.subr.bf16.mxu1 %v1891_v32  ;;  %v79_v51 = vld [vmem:[%s2930_s1 + $0xf0] sm:$0xff]  ;;  %v1871_v52 = vpack.c.bf16 %v83_v48, %v80_v47  ;;  %v84_v55 = vld [vmem:[%s2930_s1 + $0x118] sm:$0xff]  ;;  %v86_v56 = vld [vmem:[%s2930_s1 + $0x128] sm:$0xff] }
   0xe   :  { %1862 = vmatpush1.bf16.msra.mxu0 %v1861_v31  ;;  %v89_v57 = vld [vmem:[%s2930_s1 + $0x140] sm:$0xff]  ;;  %v1873_v58 = vpack.c.bf16 %v82_v53, %v79_v51  ;;  %v1903_v59 = vpack.c.bf16 %v84_v55, %v81_v54  ;;  %v88_v62 = vld [vmem:[%s2930_s1 + $0x138] sm:$0xff]  ;;  %v87_v63 = vld [vmem:[%s2930_s1 + $0x130] sm:$0xff] }
   0xf   :  { %1864 = vmatprep.subr.bf16.mxu0 %v1863_v34  ;;  %v85_v60 = vld [vmem:[%s2930_s1 + $0x120] sm:$0xff]  ;;  %v1875_v61 = vpack.c.bf16 %v89_v57, %v86_v56  ;;  %v90_v0 = vld [vmem:[%s2930_s1 + $0x148] sm:$0xff]  ;;  %v92_v1 = vld [vmem:[%s2930_s1 + $0x158] sm:$0xff] }
  0x10   :  { %1894 = vmatpush3.bf16.msra.mxu1 %v1891_v32  ;;  %v95_v2 = vld [vmem:[%s2930_s1 + $0x170] sm:$0xff]  ;;  %v1877_v3 = vpack.c.bf16 %v88_v62, %v85_v60  ;;  %v1907_v4 = vpack.c.bf16 %v90_v0, %v87_v63  ;;  %v94_v7 = vld [vmem:[%s2930_s1 + $0x168] sm:$0xff]  ;;  %v93_v8 = vld [vmem:[%s2930_s1 + $0x160] sm:$0xff] }
  0x11   :  { %1896 = vmatprep.subr.bf16.mxu1 %v1895_v41  ;;  %v91_v5 = vld [vmem:[%s2930_s1 + $0x150] sm:$0xff]  ;;  %v1879_v6 = vpack.c.bf16 %v95_v2, %v92_v1  ;;  %v96_v9 = vld [vmem:[%s2930_s1 + $0x178] sm:$0xff]  ;;  %v265_v10 = vld [vmem:[%s2931_s2 + $0x80] sm:$0xff] }
  0x12   :  { %1866 = vmatpush1.bf16.msra.mxu0 %v1865_v40  ;;  %v266_v11 = vld [vmem:[%s2931_s2 + $0x88] sm:$0xff]  ;;  %v1881_v13 = vpack.c.bf16 %v94_v7, %v91_v5  ;;  %v1911_v14 = vpack.c.bf16 %v96_v9, %v93_v8  ;;  %v281_v16 = vld [vmem:[%s2931_s2 + $0x100] sm:$0xff] }
  0x13   :  { %1868 = vmatprep.subr.bf16.mxu0 %v1867_v43  ;;  %v1915_v15 = vpack.c.bf16 %v266_v11, %v265_v10  ;;  %v282_v17 = vld [vmem:[%s2931_s2 + $0x108] sm:$0xff] }
  0x14   :  { %1898 = vmatpush3.bf16.msra.mxu1 %v1895_v41 }
  0x15   :  { %1900 = vmatprep.subr.bf16.mxu1 %v1899_v50 }
  0x16   :  { %1870 = vmatpush1.bf16.msra.mxu0 %v1869_v49 }
  0x17   :  { %1872 = vmatprep.subr.bf16.mxu0 %v1871_v52 }
  0x18   :  { %1902 = vmatpush3.bf16.msra.mxu1 %v1899_v50 }
  0x19   :  { %1904 = vmatprep.subr.bf16.mxu1 %v1903_v59 }
  0x1a   :  { %1874 = vmatpush1.bf16.msra.mxu0 %v1873_v58 }
  0x1b   :  { %1876 = vmatprep.subr.bf16.mxu0 %v1875_v61 }
  0x1c   :  { %1906 = vmatpush3.bf16.msra.mxu1 %v1903_v59 }
  0x1d   :  { %1908 = vmatprep.subr.bf16.mxu1 %v1907_v4 }
  0x1e   :  { %1878 = vmatpush1.bf16.msra.mxu0 %v1877_v3 }
  0x1f   :  { %1880 = vmatprep.subr.bf16.mxu0 %v1879_v6 }
  0x20   :  { %1910 = vmatpush3.bf16.msra.mxu1 %v1907_v4 }
  0x21   :  { %14 = vsyncpa [#allocation3], 0  ;;  %1912 = vmatprep.subr.bf16.mxu1 %v1911_v14  ;;  %v1947_v18 = vpack.c.bf16 %v282_v17, %v281_v16  ;;  %v35_v19 = vlaneseq  ;;  %v249_v20 = vld [vmem:[%s2931_s2] sm:$0xff]  ;;  %v250_v21 = vld [vmem:[%s2931_s2 + $0x8] sm:$0xff]  ;;  %v2188_v34 = vmov 1.0   ;;  %vm651_vm2 = vcmask 130048  }
  0x22   :  { %1882 = vmatpush1.bf16.msra.mxu0 %v1881_v13  ;;  %v267_v23 = vld [vmem:[%s2931_s2 + $0x90] sm:$0xff]  ;;  %v268_v24 = vld [vmem:[%s2931_s2 + $0x98] sm:$0xff]  ;;  %v1917_v25 = vpack.c.bf16 %v250_v21, %v249_v20  ;;  %v269_v30 = vld [vmem:[%s2931_s2 + $0xa0] sm:$0xff]  ;;  %vm1121_vm3 = vcmask 261120  }
  0x23   :  { %1916 = vmatprep.subr.bf16.mxu0 %v1915_v15  ;;  %v36_v22 = vand.u32 127, %v35_v19  ;;  %v1919_v27 = vpack.c.bf16 %v268_v24, %v267_v23  ;;  %v251_v28 = vld [vmem:[%s2931_s2 + $0x10] sm:$0xff]  ;;  %v252_v29 = vld [vmem:[%s2931_s2 + $0x18] sm:$0xff]  ;;  %v270_v31 = vld [vmem:[%s2931_s2 + $0xa8] sm:$0xff] }
  0x24   :  { %1914 = vmatpush3.bf16.msra.mxu1 %v1911_v14  ;;  %v283_v32 = vld [vmem:[%s2931_s2 + $0x110] sm:$0xff]  ;;  %v284_v33 = vld [vmem:[%s2931_s2 + $0x118] sm:$0xff]  ;;  %v1921_v35 = vpack.c.bf16 %v252_v29, %v251_v28  ;;  %v1923_v37 = vpack.c.bf16 %v270_v31, %v269_v30  ;;  %v253_v39 = vld [vmem:[%s2931_s2 + $0x20] sm:$0xff] }
  0x25   :  { %1948 = vmatprep.subr.bf16.mxu1 %v1947_v18  ;;  %v1951_v38 = vpack.c.bf16 %v284_v33, %v283_v32  ;;  %v254_v40 = vld [vmem:[%s2931_s2 + $0x28] sm:$0xff]  ;;  %v271_v41 = vld [vmem:[%s2931_s2 + $0xb0] sm:$0xff]  ;;  %v285_v42 = vld [vmem:[%s2931_s2 + $0x120] sm:$0xff] }
  0x26   :  { %v286_v43 = vld [vmem:[%s2931_s2 + $0x128] sm:$0xff]  ;;  %v1925_v44 = vpack.c.bf16 %v254_v40, %v253_v39  ;;  %v255_v47 = vld [vmem:[%s2931_s2 + $0x30] sm:$0xff]  ;;  %v256_v48 = vld [vmem:[%s2931_s2 + $0x38] sm:$0xff] }
  0x27   :  { %v1955_v46 = vpack.c.bf16 %v286_v43, %v285_v42  ;;  %v273_v49 = vld [vmem:[%s2931_s2 + $0xc0] sm:$0xff]  ;;  %v274_v50 = vld [vmem:[%s2931_s2 + $0xc8] sm:$0xff]  ;;  %v287_v51 = vld [vmem:[%s2931_s2 + $0x130] sm:$0xff]  ;;  %v1929_v53 = vpack.c.bf16 %v256_v48, %v255_v47 }
  0x28   :  { %v288_v52 = vld [vmem:[%s2931_s2 + $0x138] sm:$0xff]  ;;  %v1931_v54 = vpack.c.bf16 %v274_v50, %v273_v49  ;;  %v257_v56 = vld [vmem:[%s2931_s2 + $0x40] sm:$0xff]  ;;  %v258_v57 = vld [vmem:[%s2931_s2 + $0x48] sm:$0xff] }
  0x29   :  { %v1959_v55 = vpack.c.bf16 %v288_v52, %v287_v51  ;;  %v275_v58 = vld [vmem:[%s2931_s2 + $0xd0] sm:$0xff]  ;;  %v276_v59 = vld [vmem:[%s2931_s2 + $0xd8] sm:$0xff]  ;;  %v289_v60 = vld [vmem:[%s2931_s2 + $0x140] sm:$0xff]  ;;  %v1933_v62 = vpack.c.bf16 %v258_v57, %v257_v56 }
  0x2a   :  { %v290_v61 = vld [vmem:[%s2931_s2 + $0x148] sm:$0xff]  ;;  %v1935_v63 = vpack.c.bf16 %v276_v59, %v275_v58  ;;  %v259_v1 = vld [vmem:[%s2931_s2 + $0x50] sm:$0xff]  ;;  %v260_v2 = vld [vmem:[%s2931_s2 + $0x58] sm:$0xff] }
  0x2b   :  { %v1963_v0 = vpack.c.bf16 %v290_v61, %v289_v60  ;;  %v277_v3 = vld [vmem:[%s2931_s2 + $0xe0] sm:$0xff]  ;;  %v278_v4 = vld [vmem:[%s2931_s2 + $0xe8] sm:$0xff]  ;;  %v291_v5 = vld [vmem:[%s2931_s2 + $0x150] sm:$0xff]  ;;  %v1937_v7 = vpack.c.bf16 %v260_v2, %v259_v1 }
  0x2c   :  { %v292_v6 = vld [vmem:[%s2931_s2 + $0x158] sm:$0xff]  ;;  %v1939_v8 = vpack.c.bf16 %v278_v4, %v277_v3  ;;  %v261_v10 = vld [vmem:[%s2931_s2 + $0x60] sm:$0xff]  ;;  %v262_v11 = vld [vmem:[%s2931_s2 + $0x68] sm:$0xff] }
  0x2d   :  { %v1967_v9 = vpack.c.bf16 %v292_v6, %v291_v5  ;;  %v279_v13 = vld [vmem:[%s2931_s2 + $0xf0] sm:$0xff]  ;;  %v280_v14 = vld [vmem:[%s2931_s2 + $0xf8] sm:$0xff]  ;;  %v293_v15 = vld [vmem:[%s2931_s2 + $0x160] sm:$0xff]  ;;  %v1941_v17 = vpack.c.bf16 %v262_v11, %v261_v10 }
  0x2e   :  { %v294_v16 = vld [vmem:[%s2931_s2 + $0x168] sm:$0xff]  ;;  %v263_v20 = vld [vmem:[%s2931_s2 + $0x70] sm:$0xff]  ;;  %v264_v21 = vld [vmem:[%s2931_s2 + $0x78] sm:$0xff] }
  0x2f   :  { %v1971_v19 = vpack.c.bf16 %v294_v16, %v293_v15  ;;  %v295_v23 = vld [vmem:[%s2931_s2 + $0x170] sm:$0xff]  ;;  %v296_v24 = vld [vmem:[%s2931_s2 + $0x178] sm:$0xff]  ;;  %v1377_v29 = vld [vmem:[%s2931_s2 + $0x280] sm:$0xff] }
  0x30   :  { %v1378_v30 = vld [vmem:[%s2931_s2 + $0x288] sm:$0xff]  ;;  %v1345_v32 = vld [vmem:[%s2931_s2 + $0x180] sm:$0xff]  ;;  %v1347_v40 = vld [vmem:[%s2931_s2 + $0x190] sm:$0xff] }
  0x31   :  { %v2011_v31 = vpack.c.bf16 %v1378_v30, %v1377_v29  ;;  %v1346_v33 = vld [vmem:[%s2931_s2 + $0x188] sm:$0xff]  ;;  %v1379_v43 = vld [vmem:[%s2931_s2 + $0x290] sm:$0xff]  ;;  %v1349_v50 = vld [vmem:[%s2931_s2 + $0x1a0] sm:$0xff] }
  0x32   :  { %v1366_v42 = vld [vmem:[%s2931_s2 + $0x228] sm:$0xff]  ;;  %v1367_v52 = vld [vmem:[%s2931_s2 + $0x230] sm:$0xff]  ;;  %v1381_v56 = vld [vmem:[%s2931_s2 + $0x2a0] sm:$0xff] }
  0x33   :  { %v1350_v51 = vld [vmem:[%s2931_s2 + $0x1a8] sm:$0xff]  ;;  %v1351_v61 = vld [vmem:[%s2931_s2 + $0x1b0] sm:$0xff]  ;;  %v1384_v2 = vld [vmem:[%s2931_s2 + $0x2b8] sm:$0xff] }
  0x34   :  { %v1382_v57 = vld [vmem:[%s2931_s2 + $0x2a8] sm:$0xff]  ;;  %v1989_v58 = vpack.c.bf16 %v1350_v51, %v1349_v50  ;;  %v1383_v1 = vld [vmem:[%s2931_s2 + $0x2b0] sm:$0xff]  ;;  %v1353_v6 = vld [vmem:[%s2931_s2 + $0x1c0] sm:$0xff] }
  0x35   :  { %v2019_v60 = vpack.c.bf16 %v1382_v57, %v1381_v56  ;;  %v2023_v5 = vpack.c.bf16 %v1384_v2, %v1383_v1  ;;  %v1385_v10 = vld [vmem:[%s2931_s2 + $0x2c0] sm:$0xff]  ;;  %v1386_v11 = vld [vmem:[%s2931_s2 + $0x2c8] sm:$0xff]  ;;  %v1355_v16 = vld [vmem:[%s2931_s2 + $0x1d0] sm:$0xff] }
  0x36   :  { %v2027_v15 = vpack.c.bf16 %v1386_v11, %v1385_v10  ;;  %v1389_v29 = vld [vmem:[%s2931_s2 + $0x2e0] sm:$0xff]  ;;  %v1390_v30 = vld [vmem:[%s2931_s2 + $0x2e8] sm:$0xff]  ;;  %v1417_v50 = vld [vmem:[%s2931_s2 + $0x390] sm:$0xff] }
  0x37   :  { %v1418_v51 = vld [vmem:[%s2931_s2 + $0x398] sm:$0xff]  ;;  %v1419_v56 = vld [vmem:[%s2931_s2 + $0x3a0] sm:$0xff]  ;;  %v1420_v57 = vld [vmem:[%s2931_s2 + $0x3a8] sm:$0xff] }
  0x38   :  { %v1405_v2 = vld [vmem:[%s2931_s2 + $0x330] sm:$0xff]  ;;  %v1426_v10 = vld [vmem:[%s2931_s2 + $0x3d8] sm:$0xff] }
  0x81   :  { %v39_v26 = vpop.permute.xlu0 %38 }
  0x82   :  { %vm43_vm0 = vcmp.eq.s32.totalorder %v39_v26, %v36_v22  ;;  %v1975_v26 = vpack.c.bf16 %v296_v24, %v295_v23 }
  0x83   :  { %1341 = vmatmul.mubr.msk.f32.vlgmr.msra.gmra.mrb[0].mxu0 %vm43_vm0, %v2188_v34  ;;  %1700 = vmatprep.mubr.msk.f32.mxu1 %vm43_vm0, %v2188_v34 }
  0x84   :  { %167 = vmatprep.mubr.f32.mxu0 %v2187_v12  ;;  %1918 = vmatpush3.bf16.msra.mxu0 %v1917_v25  ;;  %v272_v12 = vld [vmem:[%s2931_s2 + $0xb8] sm:$0xff]  ;;  %v1361_v25 = vld [vmem:[%s2931_s2 + $0x200] sm:$0xff] }
  0x85   :  { %v42_v36 = vpop.permute.xlu0 %41  ;;  %1920 = vmatprep.subr.bf16.mxu0 %v1919_v27  ;;  %v1927_v45 = vpack.c.bf16 %v272_v12, %v271_v41  ;;  %v1362_v27 = vld [vmem:[%s2931_s2 + $0x208] sm:$0xff]  ;;  %v1348_v41 = vld [vmem:[%s2931_s2 + $0x198] sm:$0xff]  ;;  %v1365_v12 = vld [vmem:[%s2931_s2 + $0x220] sm:$0xff] }
  0x86   :  { %vm44_vm1 = vcmp.eq.s32.totalorder %v42_v36, %v36_v22  ;;  %v1945_v22 = vpack.c.bf16 %v264_v21, %v263_v20  ;;  %v1979_v28 = vpack.c.bf16 %v1362_v27, %v1361_v25  ;;  %v1985_v47 = vpack.c.bf16 %v1348_v41, %v1347_v40  ;;  %v1387_v20 = vld [vmem:[%s2931_s2 + $0x2d0] sm:$0xff]  ;;  %v1388_v21 = vld [vmem:[%s2931_s2 + $0x2d8] sm:$0xff]  ;;  %v1357_v25 = vld [vmem:[%s2931_s2 + $0x1e0] sm:$0xff] }
  0x87   :  { %1342 = vmatmul.mubr.msk.f32.gmra.mrb[2].mxu0 %vm44_vm1, %v2188_v34  ;;  %1701 = vmatmul.mubr.msk.f32.vlgmr.msra.gmra.mrb[0].mxu1 %vm44_vm1, %v2188_v34  ;;  %v1363_v34 = vld [vmem:[%s2931_s2 + $0x210] sm:$0xff]  ;;  %v2031_v24 = vpack.c.bf16 %v1388_v21, %v1387_v20  ;;  %v1415_v40 = vld [vmem:[%s2931_s2 + $0x380] sm:$0xff]  ;;  %v1416_v41 = vld [vmem:[%s2931_s2 + $0x388] sm:$0xff] }
  0x88   :  { %1922 = vmatpush3.bf16.msra.mxu0 %v1921_v35  ;;  %1950 = vmatpush3.bf16.msra.mxu1 %v1947_v18  ;;  %v1943_v18 = vpack.c.bf16 %v280_v14, %v279_v13  ;;  %v1364_v35 = vld [vmem:[%s2931_s2 + $0x218] sm:$0xff]  ;;  %v1375_v27 = vld [vmem:[%s2931_s2 + $0x270] sm:$0xff]  ;;  %v1411_v20 = vld [vmem:[%s2931_s2 + $0x360] sm:$0xff] }
  0x89   :  { %1924 = vmatprep.subr.bf16.mxu0 %v1923_v37  ;;  %1952 = vmatprep.subr.bf16.mxu1 %v1951_v38  ;;  %v1981_v37 = vpack.c.bf16 %v1346_v33, %v1345_v32  ;;  %v1983_v39 = vpack.c.bf16 %v1364_v35, %v1363_v34  ;;  %v2035_v33 = vpack.c.bf16 %v1390_v30, %v1389_v29  ;;  %v1359_v34 = vld [vmem:[%s2931_s2 + $0x1f0] sm:$0xff]  ;;  %v1360_v35 = vld [vmem:[%s2931_s2 + $0x1f8] sm:$0xff]  ;;  %v1412_v21 = vld [vmem:[%s2931_s2 + $0x368] sm:$0xff] }
  0x8a   :  { %v1393_v29 = vld [vmem:[%s2933_s4 + $0x10] sm:$0xff] }
  0x8c   :  { %1926 = vmatpush3.bf16.msra.mxu0 %v1925_v44  ;;  %1954 = vmatpush3.bf16.msra.mxu1 %v1951_v38  ;;  %v1380_v44 = vld [vmem:[%s2931_s2 + $0x298] sm:$0xff] }
  0x8d   :  { %1928 = vmatprep.subr.bf16.mxu0 %v1927_v45  ;;  %1956 = vmatprep.subr.bf16.mxu1 %v1955_v46 }
  0x90   :  { %1930 = vmatpush3.bf16.msra.mxu0 %v1929_v53  ;;  %1958 = vmatpush3.bf16.msra.mxu1 %v1955_v46  ;;  %v1987_v53 = vpack.c.bf16 %v1366_v42, %v1365_v12  ;;  %v2009_v12 = vpack.c.bf16 %v1360_v35, %v1359_v34 }
  0x91   :  { %1932 = vmatprep.subr.bf16.mxu0 %v1931_v54  ;;  %1960 = vmatprep.subr.bf16.mxu1 %v1959_v55  ;;  %v2015_v54 = vpack.c.bf16 %v1380_v44, %v1379_v43  ;;  %v2051_v43 = vpack.c.bf16 %v1416_v41, %v1415_v40  ;;  %v1399_v44 = vld [vmem:[%s2931_s2 + $0x300] sm:$0xff] }
  0x94   :  { %1934 = vmatpush3.bf16.msra.mxu0 %v1933_v62  ;;  %1962 = vmatpush3.bf16.msra.mxu1 %v1959_v55  ;;  %v1368_v55 = vld [vmem:[%s2931_s2 + $0x238] sm:$0xff] }
  0x95   :  { %1936 = vmatprep.subr.bf16.mxu0 %v1935_v63  ;;  %1964 = vmatprep.subr.bf16.mxu1 %v1963_v0  ;;  %v1991_v59 = vpack.c.bf16 %v1368_v55, %v1367_v52  ;;  %v1352_v62 = vld [vmem:[%s2931_s2 + $0x1b8] sm:$0xff]  ;;  %v1369_v63 = vld [vmem:[%s2931_s2 + $0x240] sm:$0xff] }
  0x96   :  { %v1993_v3 = vpack.c.bf16 %v1352_v62, %v1351_v61  ;;  %v1402_v55 = vld [vmem:[%s2931_s2 + $0x318] sm:$0xff]  ;;  %v1404_v61 = vld [vmem:[%s2931_s2 + $0x328] sm:$0xff]  ;;  %v1421_v62 = vld [vmem:[%s2931_s2 + $0x3b0] sm:$0xff] }
  0x98   :  { %1938 = vmatpush3.bf16.msra.mxu0 %v1937_v7  ;;  %1966 = vmatpush3.bf16.msra.mxu1 %v1963_v0  ;;  %v1370_v0 = vld [vmem:[%s2931_s2 + $0x248] sm:$0xff] }
  0x99   :  { %1940 = vmatprep.subr.bf16.mxu0 %v1939_v8  ;;  %1968 = vmatprep.subr.bf16.mxu1 %v1967_v9  ;;  %v1995_v4 = vpack.c.bf16 %v1370_v0, %v1369_v63  ;;  %v1354_v7 = vld [vmem:[%s2931_s2 + $0x1c8] sm:$0xff]  ;;  %v1371_v8 = vld [vmem:[%s2931_s2 + $0x250] sm:$0xff]  ;;  %v1422_v63 = vld [vmem:[%s2931_s2 + $0x3b8] sm:$0xff] }
  0x9a   :  { %v1997_v13 = vpack.c.bf16 %v1354_v7, %v1353_v6  ;;  %v2063_v1 = vpack.c.bf16 %v1422_v63, %v1421_v62  ;;  %v1407_v7 = vld [vmem:[%s2931_s2 + $0x340] sm:$0xff] }
  0x9b   :  { %v1435_v63 = vld [vmem:[%s2931_s2 + $0x420] sm:$0xff] }
  0x9c   :  { %1942 = vmatpush3.bf16.msra.mxu0 %v1941_v17  ;;  %1970 = vmatpush3.bf16.msra.mxu1 %v1967_v9  ;;  %v1372_v9 = vld [vmem:[%s2931_s2 + $0x258] sm:$0xff] }
  0x9d   :  { %1944 = vmatprep.subr.bf16.mxu0 %v1943_v18  ;;  %1972 = vmatprep.subr.bf16.mxu1 %v1971_v19  ;;  %v1999_v14 = vpack.c.bf16 %v1372_v9, %v1371_v8  ;;  %v1356_v17 = vld [vmem:[%s2931_s2 + $0x1d8] sm:$0xff]  ;;  %v1373_v18 = vld [vmem:[%s2931_s2 + $0x260] sm:$0xff]  ;;  %v1408_v8 = vld [vmem:[%s2931_s2 + $0x348] sm:$0xff] }
  0x9e   :  { %v1425_v9 = vld [vmem:[%s2931_s2 + $0x3d0] sm:$0xff]  ;;  %v2069_v11 = vpack.c.bf16 %v1408_v8, %v1407_v7 }
  0xa0   :  { %1946 = vmatpush3.bf16.msra.mxu0 %v1945_v22  ;;  %1974 = vmatpush3.bf16.msra.mxu1 %v1971_v19  ;;  %v1374_v19 = vld [vmem:[%s2931_s2 + $0x268] sm:$0xff]  ;;  %v2001_v22 = vpack.c.bf16 %v1356_v17, %v1355_v16  ;;  %v1427_v16 = vld [vmem:[%s2931_s2 + $0x3e0] sm:$0xff] }
  0xa1   :  { %1976 = vmatprep.subr.bf16.mxu1 %v1975_v26  ;;  %1980 = vmatprep.subr.bf16.mxu0 %v1979_v28  ;;  %v2003_v23 = vpack.c.bf16 %v1374_v19, %v1373_v18  ;;  %v1376_v28 = vld [vmem:[%s2931_s2 + $0x278] sm:$0xff]  ;;  %v1428_v17 = vld [vmem:[%s2931_s2 + $0x3e8] sm:$0xff] }
  0xa2   :  { %v2007_v32 = vpack.c.bf16 %v1376_v28, %v1375_v27  ;;  %v2075_v19 = vpack.c.bf16 %v1428_v17, %v1427_v16  ;;  %v1414_v27 = vld [vmem:[%s2931_s2 + $0x378] sm:$0xff]  ;;  %v1443_v16 = vld [vmem:[%s2931_s2 + $0x460] sm:$0xff]  ;;  %v1444_v17 = vld [vmem:[%s2931_s2 + $0x468] sm:$0xff] }
  0xa4   :  { %1978 = vmatpush3.bf16.msra.mxu1 %v1975_v26  ;;  %v1358_v26 = vld [vmem:[%s2931_s2 + $0x1e8] sm:$0xff] }
  0xa5   :  { %2012 = vmatprep.subr.bf16.mxu1 %v2011_v31 }
 0x156   :  { %v2562_v36 = vpop.f32.mrb[0].mxu0 }
 0x157   :  { %v2564_v38 = vpop.f32.mrb[1].mxu0 }
 0x158   :  { %361 = vmatprep.mubr.f32.mxu0 %v2564_v38 }
 0x159   :  { %362 = vmatmul.mubr.f32.vlgmr.msra.gmra.mrb[4].mxu0 %v2562_v36 }
 0x15a   :  { %1982 = vmatpush3.bf16.msra.mxu0 %v1981_v37  ;;  %v2586_v45 = vpop.f32.mrb[2].mxu0  ;;  %v2588_v46 = vpop.f32.mrb[0].mxu1  ;;  %v1391_v37 = vld [vmem:[%s2931_s2 + $0x2f0] sm:$0xff] }
 0x15b   :  { %v2590_v48 = vpop.f32.mrb[3].mxu0  ;;  %v2592_v49 = vpop.f32.mrb[1].mxu1  ;;  %1984 = vmatprep.subr.bf16.mxu0 %v1983_v39  ;;  %v1392_v39 = vld [vmem:[%s2931_s2 + $0x2f8] sm:$0xff] }
 0x15c   :  { %366 = vmatprep.mubr.f32.mxu0 %v2590_v48  ;;  %1735 = vmatprep.mubr.f32.mxu1 %v2592_v49  ;;  %v2039_v42 = vpack.c.bf16 %v1392_v39, %v1391_v37 }
 0x15d   :  { %367 = vmatmul.mubr.f32.gmra.mrb[6].mxu0 %v2586_v45  ;;  %1736 = vmatmul.mubr.f32.vlgmr.msra.gmra.mrb[2].mxu1 %v2588_v46 }
 0x15e   :  { %1986 = vmatpush3.bf16.msra.mxu0 %v1985_v47  ;;  %2014 = vmatpush3.bf16.msra.mxu1 %v2011_v31  ;;  %v2005_v31 = vpack.c.bf16 %v1358_v26, %v1357_v25  ;;  %v1400_v47 = vld [vmem:[%s2931_s2 + $0x308] sm:$0xff]  ;;  %v1413_v26 = vld [vmem:[%s2931_s2 + $0x370] sm:$0xff] }
 0x15f   :  { %562 = vmatprep.mubr.f32.mxu0 %v2564_v38  ;;  %1770 = vmatprep.mubr.f32.mxu1 %v2592_v49  ;;  %v2053_v52 = vpack.c.bf16 %v1400_v47, %v1399_v44  ;;  %v2081_v28 = vpack.c.bf16 %v1414_v27, %v1413_v26 }
 0x160   :  { %1988 = vmatprep.subr.bf16.mxu0 %v1987_v53  ;;  %2016 = vmatprep.subr.bf16.mxu1 %v2015_v54  ;;  %v2055_v53 = vpack.c.bf16 %v1418_v51, %v1417_v50 }
 0x162   :  { %1990 = vmatpush3.bf16.msra.mxu0 %v1989_v58  ;;  %2018 = vmatpush3.bf16.msra.mxu1 %v2015_v54  ;;  %v1401_v54 = vld [vmem:[%s2931_s2 + $0x310] sm:$0xff] }
 0x163   :  { %1992 = vmatprep.subr.bf16.mxu0 %v1991_v59  ;;  %2020 = vmatprep.subr.bf16.mxu1 %v2019_v60  ;;  %v2057_v58 = vpack.c.bf16 %v1402_v55, %v1401_v54  ;;  %v2059_v59 = vpack.c.bf16 %v1420_v57, %v1419_v56  ;;  %v1431_v54 = vld [vmem:[%s2931_s2 + $0x400] sm:$0xff]  ;;  %v1432_v55 = vld [vmem:[%s2931_s2 + $0x408] sm:$0xff]  ;;  %v1394_v56 = vld [vmem:[%s2933_s4 + $0x18] sm:$0xff] }
 0x164   :  { %v447_v57 = vld [vmem:[%s2933_s4] sm:$0xff] }
 0x166   :  { %1994 = vmatpush3.bf16.msra.mxu0 %v1993_v3  ;;  %2022 = vmatpush3.bf16.msra.mxu1 %v2019_v60  ;;  %v1403_v60 = vld [vmem:[%s2931_s2 + $0x320] sm:$0xff]  ;;  %v1406_v3 = vld [vmem:[%s2931_s2 + $0x338] sm:$0xff] }
 0x167   :  { %1996 = vmatprep.subr.bf16.mxu0 %v1995_v4  ;;  %2024 = vmatprep.subr.bf16.mxu1 %v2023_v5  ;;  %v2061_v0 = vpack.c.bf16 %v1404_v61, %v1403_v60  ;;  %v1423_v4 = vld [vmem:[%s2931_s2 + $0x3c0] sm:$0xff]  ;;  %v1434_v60 = vld [vmem:[%s2931_s2 + $0x418] sm:$0xff]  ;;  %v448_v61 = vld [vmem:[%s2933_s4 + $0x8] sm:$0xff] }
 0x16a   :  { %1998 = vmatpush3.bf16.msra.mxu0 %v1997_v13  ;;  %2026 = vmatpush3.bf16.msra.mxu1 %v2023_v5  ;;  %v2065_v5 = vpack.c.bf16 %v1406_v3, %v1405_v2  ;;  %v2071_v13 = vpack.c.bf16 %v1426_v10, %v1425_v9  ;;  %v1437_v2 = vld [vmem:[%s2931_s2 + $0x430] sm:$0xff]  ;;  %v1438_v3 = vld [vmem:[%s2931_s2 + $0x438] sm:$0xff] }
 0x16b   :  { %2000 = vmatprep.subr.bf16.mxu0 %v1999_v14  ;;  %2028 = vmatprep.subr.bf16.mxu1 %v2027_v15  ;;  %v1409_v14 = vld [vmem:[%s2931_s2 + $0x350] sm:$0xff]  ;;  %v1442_v10 = vld [vmem:[%s2931_s2 + $0x458] sm:$0xff] }
 0x16c   :  { %v1441_v9 = vld [vmem:[%s2931_s2 + $0x450] sm:$0xff] }
 0x16e   :  { %2002 = vmatpush3.bf16.msra.mxu0 %v2001_v22  ;;  %2030 = vmatpush3.bf16.msra.mxu1 %v2027_v15  ;;  %v1410_v15 = vld [vmem:[%s2931_s2 + $0x358] sm:$0xff]  ;;  %v1429_v22 = vld [vmem:[%s2931_s2 + $0x3f0] sm:$0xff] }
 0x16f   :  { %2004 = vmatprep.subr.bf16.mxu0 %v2003_v23  ;;  %2032 = vmatprep.subr.bf16.mxu1 %v2031_v24  ;;  %v2073_v18 = vpack.c.bf16 %v1410_v15, %v1409_v14  ;;  %v1430_v23 = vld [vmem:[%s2931_s2 + $0x3f8] sm:$0xff]  ;;  %v2103_v14 = vpack.c.bf16 %v1442_v10, %v1441_v9 }
 0x170   :  { %v2079_v25 = vpack.c.bf16 %v1430_v23, %v1429_v22  ;;  %v1447_v22 = vld [vmem:[%s2933_s4 + $0x20] sm:$0xff] }
 0x172   :  { %2006 = vmatpush3.bf16.msra.mxu0 %v2005_v31  ;;  %2034 = vmatpush3.bf16.msra.mxu1 %v2031_v24  ;;  %v2077_v24 = vpack.c.bf16 %v1412_v21, %v1411_v20  ;;  %v1446_v20 = vld [vmem:[%s2931_s2 + $0x478] sm:$0xff] }
 0x173   :  { %2008 = vmatprep.subr.bf16.mxu0 %v2007_v32  ;;  %2036 = vmatprep.subr.bf16.mxu1 %v2035_v33 }
 0x176   :  { %2010 = vmatpush3.bf16.msra.mxu0 %v2009_v12  ;;  %2038 = vmatpush3.bf16.msra.mxu1 %v2035_v33 }
 0x177   :  { %2040 = vmatprep.subr.bf16.mxu1 %v2039_v42  ;;  %2052 = vmatprep.subr.bf16.mxu0 %v2051_v43 }
 0x179   :  { %563 = vmatmul.mubr.f32.vlgmr.msra.gmra.mrb[8].mxu0 %v2562_v36 }
 0x17a   :  { %567 = vmatprep.mubr.f32.mxu0 %v2590_v48  ;;  %2042 = vmatpush3.bf16.msra.mxu1 %v2039_v42 }
 0x17b   :  { %2054 = vmatpush3.bf16.msra.mxu0 %v2053_v52 }
 0x17c   :  { %2056 = vmatprep.subr.bf16.mxu0 %v2055_v53 }
 0x17d   :  { %568 = vmatmul.mubr.f32.gmra.mrb[10].mxu0 %v2586_v45  ;;  %1771 = vmatmul.mubr.f32.vlgmr.msra.gmra.mrb[4].mxu1 %v2588_v46 }
 0x17e   :  { %927 = vmatprep.mubr.f32.mxu0 %v2564_v38  ;;  %v1424_v38 = vld [vmem:[%s2931_s2 + $0x3c8] sm:$0xff]  ;;  %1777 = vmatprep.mubr.msk.f32.mxu1 %vm651_vm2, %v1393_v29 }
 0x17f   :  { %2058 = vmatpush3.bf16.msra.mxu0 %v2057_v58  ;;  %v2067_v6 = vpack.c.bf16 %v1424_v38, %v1423_v4  ;;  %v2083_v58 = vpack.c.bf16 %v1432_v55, %v1431_v54  ;;  %v2095_v4 = vpack.c.bf16 %v1438_v3, %v1437_v2  ;;  %v1439_v38 = vld [vmem:[%s2931_s2 + $0x440] sm:$0xff]  ;;  %v1111_v29 = vld [vmem:[%s2934_s5 + $0x8] sm:$0xff] }
 0x180   :  { %2060 = vmatprep.subr.bf16.mxu0 %v2059_v59  ;;  %v1433_v59 = vld [vmem:[%s2931_s2 + $0x410] sm:$0xff] }
 0x181   :  { %v2087_v62 = vpack.c.bf16 %v1434_v60, %v1433_v59 }
 0x183   :  { %2062 = vmatpush3.bf16.msra.mxu0 %v2061_v0  ;;  %v1436_v0 = vld [vmem:[%s2931_s2 + $0x428] sm:$0xff] }
 0x184   :  { %2064 = vmatprep.subr.bf16.mxu0 %v2063_v1  ;;  %v2091_v1 = vpack.c.bf16 %v1436_v0, %v1435_v63 }
 0x187   :  { %2066 = vmatpush3.bf16.msra.mxu0 %v2065_v5 }
 0x188   :  { %2068 = vmatprep.subr.bf16.mxu0 %v2067_v6 }
 0x18b   :  { %2070 = vmatpush3.bf16.msra.mxu0 %v2069_v11 }
 0x18c   :  { %2072 = vmatprep.subr.bf16.mxu0 %v2071_v13 }
 0x18f   :  { %2074 = vmatpush3.bf16.msra.mxu0 %v2073_v18  ;;  %v2107_v18 = vpack.c.bf16 %v1444_v17, %v1443_v16 }
 0x190   :  { %2076 = vmatprep.subr.bf16.mxu0 %v2075_v19  ;;  %v1445_v19 = vld [vmem:[%s2931_s2 + $0x470] sm:$0xff] }
 0x191   :  { %v2111_v21 = vpack.c.bf16 %v1446_v20, %v1445_v19 }
 0x193   :  { %2078 = vmatpush3.bf16.msra.mxu0 %v2077_v24 }
 0x194   :  { %2080 = vmatprep.subr.bf16.mxu0 %v2079_v25 }
 0x197   :  { %2082 = vmatpush3.bf16.msra.mxu0 %v2081_v28  ;;  %v1448_v28 = vld [vmem:[%s2933_s4 + $0x28] sm:$0xff] }
 0x19a   :  { %928 = vmatmul.mubr.f32.vlgmr.msra.gmra.mrb[12].mxu0 %v2562_v36 }
 0x19b   :  { %932 = vmatprep.mubr.f32.mxu0 %v2590_v48 }
 0x19e   :  { %933 = vmatmul.mubr.f32.gmra.mrb[14].mxu0 %v2586_v45 }
 0x22c   :  { %v1508_v30 = vpop.f32.mrb[4].mxu0 }
 0x22d   :  { %v1509_v31 = vpop.f32.mrb[5].mxu0 }
 0x22e   :  { %v1510_v32 = vadd.f32 %v1509_v31, %v1508_v30  ;;  %v1112_v30 = vld [vmem:[%s2934_s5 + $0x10] sm:$0xff] }
 0x230   :  { %v1511_v33 = vpop.f32.mrb[6].mxu0  ;;  %v1737_v34 = vpop.f32.mrb[2].mxu1 }
 0x231   :  { %v1512_v35 = vpop.f32.mrb[7].mxu0  ;;  %v438_v37 = vpop.f32.mrb[3].mxu1 }
 0x232   :  { %v1513_v39 = vadd.f32 %v1512_v35, %v1511_v33  ;;  %v439_v36 = vadd.f32 %v1510_v32, %v438_v37  ;;  %v1113_v32 = vld [vmem:[%s2934_s5 + $0x18] sm:$0xff] }
 0x233   :  { %v2123_v33 = vpack.c.bf16 %v1113_v32, %v1112_v30 }
 0x234   :  { %v444_v40 = vadd.f32 %v1737_v34, %v1513_v39  ;;  %v1451_v34 = vld [vmem:[%s2932_s3] ss:$0 sm:$0xff] }
 0x236   :  { %v2047_v48 = vpack.c.bf16 %v444_v40, %v439_v36 }
 0x24c   :  { %v1564_v41 = vpop.f32.mrb[8].mxu0 }
 0x24d   :  { %v1565_v45 = vpop.f32.mrb[9].mxu0 }
 0x24e   :  { %v1566_v12 = vadd.f32 %v1565_v45, %v1564_v41  ;;  %v1205_v41 = vld [vmem:[%s2936_s7] sm:$0xff]  ;;  %v1206_v45 = vld [vmem:[%s2936_s7 + $0x8] sm:$0xff] }
 0x250   :  { %v1567_v42 = vpop.f32.mrb[10].mxu0  ;;  %v1772_v43 = vpop.f32.mrb[4].mxu1 }
 0x251   :  { %v1568_v44 = vpop.f32.mrb[11].mxu0  ;;  %v639_v47 = vpop.f32.mrb[5].mxu1 }
 0x252   :  { %v1569_v50 = vadd.f32 %v1568_v44, %v1567_v42  ;;  %v640_v51 = vadd.f32 %v1566_v12, %v639_v47  ;;  %v1207_v12 = vld [vmem:[%s2936_s7 + $0x10] sm:$0xff]  ;;  %v2127_v42 = vpack.c.bf16 %v1206_v45, %v1205_v41  ;;  %v1452_v47 = vld [vmem:[%s2935_s6] ss:$0 sm:$0xff]  ;;  %s2189_s6 = smov [#allocation2]  }
 0x254   :  { %v645_v52 = vadd.f32 %v1772_v43, %v1569_v50  ;;  %v1208_v43 = vld [vmem:[%s2936_s7 + $0x18] sm:$0xff] }
 0x255   :  { %v2131_v44 = vpack.c.bf16 %v1208_v43, %v1207_v12 }
 0x256   :  { %v2043_v53 = vpack.c.bf16 %v645_v52, %v640_v51 }
 0x258   :  { %2044 = vmatprep.subr.bf16.mxu1 %v2043_v53 }
 0x259   :  { %2046 = vmatpush3.bf16.msra.mxu1 %v2043_v53 }
 0x25a   :  { %2048 = vmatprep.subr.bf16.mxu1 %v2047_v48 }
 0x25c   :  { %1778 = vmatmul.mubr.msk.f32.vlgmr.msra.gmra.mrb[6].mxu1 %vm651_vm2, %v1394_v56  ;;  %v1455_v56 = vld [vmem:[%s2937_s8] ss:$0 sm:$0xff]  ;;  %s1328_s8 = sshll.u32 %s2189_s6, 4  ;;  %s1329_s8 = int_to_ptr.vmem [resolvable:$true] %s1328_s8 }
 0x25d   :  { %2050 = vmatpush3.bf16.msra.mxu1 %v2047_v48  ;;  %1784 = vmatprep.mubr.msk.f32.mxu1 %vm651_vm2, %v447_v57  ;;  %s2162_s16 = scalar_lea.vmem %s1329_s8, 256  ;;  %p2167_p1 = scmp.lt.s32.totalorder %s1329_s8, %s1329_s8 }
 0x25e   :  { %2084 = vmatprep.subr.bf16.mxu1 %v2083_v58  ;;  %p2163_p0 = scmp.ne.s32.totalorder %s1329_s8, %s2162_s16  ;;  %p2168_p2 = scmp.lt.s32.totalorder %s2162_s16, %s2162_s16 }
 0x260   :  { %p2169_p3 = por %p2168_p2, %p2167_p1 }
 0x262   :  { %p2170_p4 = pnand %p2169_p3, %p2163_p0 }
 0x264   :  { %1785 = vmatmul.mubr.msk.f32.vlgmr.msra.gmra.mrb[6].mxu1 %vm651_vm2, %v448_v61 }
 0x265   :  { %2086 = vmatpush3.bf16.msra.mxu1 %v2083_v58  ;;  %1819 = vmatprep.mubr.f32.mxu1 %v2592_v49  ;;  %v1440_v49 = vld [vmem:[%s2931_s2 + $0x448] sm:$0xff] }
 0x266   :  { %2088 = vmatprep.subr.bf16.mxu1 %v2087_v62  ;;  %v2099_v7 = vpack.c.bf16 %v1440_v49, %v1439_v38 }
 0x269   :  { %2090 = vmatpush3.bf16.msra.mxu1 %v2087_v62 }
 0x26a   :  { %2092 = vmatprep.subr.bf16.mxu1 %v2091_v1 }
 0x26d   :  { %v1628_v5 = vpop.f32.mrb[12].mxu0  ;;  %2094 = vmatpush3.bf16.msra.mxu1 %v2091_v1 }
 0x26e   :  { %v1629_v6 = vpop.f32.mrb[13].mxu0  ;;  %2096 = vmatprep.subr.bf16.mxu1 %v2095_v4 }
 0x26f   :  { %v1630_v8 = vadd.f32 %v1629_v6, %v1628_v5 }
 0x271   :  { %v1631_v11 = vpop.f32.mrb[14].mxu0  ;;  %2098 = vmatpush3.bf16.msra.mxu1 %v2095_v4 }
 0x272   :  { %v1632_v13 = vpop.f32.mrb[15].mxu0  ;;  %2100 = vmatprep.subr.bf16.mxu1 %v2099_v7 }
 0x273   :  { %v1633_v15 = vadd.f32 %v1632_v13, %v1631_v11 }
 0x275   :  { %2102 = vmatpush3.bf16.msra.mxu1 %v2099_v7 }
 0x276   :  { %2104 = vmatprep.subr.bf16.mxu1 %v2103_v14 }
 0x279   :  { %2106 = vmatpush3.bf16.msra.mxu1 %v2103_v14 }
 0x27a   :  { %2108 = vmatprep.subr.bf16.mxu1 %v2107_v18 }
 0x27d   :  { %2110 = vmatpush3.bf16.msra.mxu1 %v2107_v18 }
 0x27e   :  { %2112 = vmatprep.subr.bf16.mxu1 %v2111_v21 }
 0x281   :  { %2114 = vmatpush3.bf16.msra.mxu1 %v2111_v21 }
 0x284   :  { %1820 = vmatmul.mubr.f32.vlgmr.msra.gmra.mrb[8].mxu1 %v2588_v46  ;;  %v1110_v46 = vld [vmem:[%s2934_s5] sm:$0xff] }
 0x285   :  { %1826 = vmatprep.mubr.msk.f32.mxu1 %vm651_vm2, %v1447_v22  ;;  %v2119_v31 = vpack.c.bf16 %v1111_v29, %v1110_v46 }
 0x287   :  { %2120 = vmatprep.subr.bf16.mxu0 %v2119_v31 }
 0x288   :  { %2122 = vmatpush3.bf16.msra.mxu0 %v2119_v31 }
 0x289   :  { %2124 = vmatprep.subr.bf16.mxu0 %v2123_v33 }
 0x28c   :  { %2126 = vmatpush3.bf16.msra.mxu0 %v2123_v33 }
 0x28d   :  { %2128 = vmatprep.subr.bf16.mxu0 %v2127_v42 }
 0x357   :  { %v1821_v23 = vpop.f32.mrb[8].mxu1 }
 0x358   :  { %v1010_v24 = vadd.f32 %v1821_v23, %v1633_v15  ;;  %v1004_v25 = vpop.f32.mrb[9].mxu1 }
 0x359   :  { %v1005_v26 = vadd.f32 %v1630_v8, %v1004_v25 }
 0x35b   :  { %v2115_v27 = vpack.c.bf16 %v1010_v24, %v1005_v26 }
 0x35d   :  { %2116 = vmatprep.subr.bf16.mxu1 %v2115_v27 }
 0x35e   :  { %2118 = vmatpush3.bf16.msra.mxu1 %v2115_v27 }
 0x361   :  { %1827 = vmatmul.mubr.msk.f32.vlgmr.msra.gmra.mrb[6].mxu1 %vm651_vm2, %v1448_v28 }
 0x434   :  { %v1828_v35 = vpop.f32.mrb[6].mxu1 }
 0x435   :  { %v1107_v37 = vadd.f32 %v1828_v35, %v1451_v34  ;;  %v1088_v39 = vpop.f32.mrb[7].mxu1 }
 0x436   :  { %v1106_v36 = vadd.f32 %v1451_v34, %v1088_v39 }
 0x438   :  { %2146 = vtanh.f32 %v1106_v36 }
 0x439   :  { %2148 = vtanh.f32 %v1107_v37 }
 0x442   :  { %v2147_v40 = vpop.eup %2146 }
 0x443   :  { %v2149_v48 = vpop.eup %2148  ;;  %1837 = vmatprep.mubr.msk.f32.mxu0 %vm1121_vm3, %v2147_v40 }
 0x444   :  { %1838 = vmatmul.mubr.msk.f32.vlgmr.msra.gmra.mrb[16].mxu0 %vm1121_vm3, %v2149_v48 }
 0x445   :  { %2130 = vmatpush3.bf16.msra.mxu0 %v2127_v42 }
 0x446   :  { %2132 = vmatprep.subr.bf16.mxu0 %v2131_v44 }
 0x449   :  { %2134 = vmatpush3.bf16.msra.mxu0 %v2131_v44 }
 0x517   :  { %v1839_v50 = vpop.f32.mrb[16].mxu0 }
 0x518   :  { %v1200_v51 = vadd.f32 %v1839_v50, %v1452_v47  ;;  %v1194_v52 = vpop.f32.mrb[17].mxu0 }
 0x519   :  { %v1195_v53 = vadd.f32 %v1452_v47, %v1194_v52 }
 0x51b   :  { %2150 = vtanh.f32 %v1195_v53 }
 0x51c   :  { %2152 = vtanh.f32 %v1200_v51 }
 0x525   :  { %v2151_v54 = vpop.eup %2150 }
 0x526   :  { %v2153_v55 = vpop.eup %2152  ;;  %1848 = vmatprep.mubr.msk.f32.mxu0 %vm1121_vm3, %v2151_v54 }
 0x527   :  { %1849 = vmatmul.mubr.msk.f32.vlgmr.msra.gmra.mrb[18].mxu0 %vm1121_vm3, %v2153_v55 }
 0x5fa   :  { %v1850_v57 = vpop.f32.mrb[18].mxu0 }
 0x5fb   :  { %v1288_v58 = vpop.f32.mrb[19].mxu0  ;;  %v1294_v60 = vadd.f32 %v1850_v57, %v1455_v56 }
 0x5fc   :  { %v1289_v59 = vadd.f32 %v1455_v56, %v1288_v58 }
 0x5fe   :  { %1297 = vmax.xlane.f32.xlu1 %v1289_v59 }
 0x602   :  { %1299 = vmax.xlane.f32.xlu1 %v1294_v60 }
 0x68b   :  { %v1298_v61 = vpop.xlane.xlu1 %1297 }
 0x68c   :  { %v1301_v62 = vsub.f32 %v1289_v59, %v1298_v61 }
 0x68e   :  { %v1303_v63 = vmul.f32 1.442695, %v1301_v62 }
 0x68f   :  { %v1300_v0 = vpop.xlane.xlu1 %1299 }
 0x690   :  { %2154 = vpow2.f32 %v1303_v63  ;;  %v1302_v1 = vsub.f32 %v1294_v60, %v1300_v0 }
 0x692   :  { %v1305_v2 = vmul.f32 1.442695, %v1302_v1 }
 0x694   :  { %2156 = vpow2.f32 %v1305_v2 }
 0x69a   :  { %v2155_v3 = vpop.eup %2154 }
 0x69b   :  { %1307 = vadd.xlane.f32.xlu0 %v2155_v3 }
 0x69e   :  { %v2157_v4 = vpop.eup %2156 }
 0x69f   :  { %1309 = vadd.xlane.f32.xlu1 %v2157_v4 }
 0x728   :  { %v1308_v38 = vpop.xlane.xlu0 %1307 }
 0x729   :  { %2158 = vrcp.f32 %v1308_v38 }
 0x72c   :  { %v1310_v49 = vpop.xlane.xlu1 %1309 }
 0x72d   :  { %2160 = vrcp.f32 %v1310_v49 }
 0x733   :  { %v2159_v5 = vpop.eup %2158 }
 0x734   :  { %v1313_v6 = vmul.f32 %v2159_v5, %v1308_v38 }
 0x736   :  { %v1315_v7 = vsub.f32 2.0, %v1313_v6 }
 0x737   :  { %v2161_v8 = vpop.eup %2160 }
 0x738   :  { %v1317_v9 = vmul.f32 %v2159_v5, %v1315_v7  ;;  %v1314_v10 = vmul.f32 %v2161_v8, %v1310_v49 }
 0x73a   :  { %v1319_v11 = vmul.f32 %v2155_v3, %v1317_v9  ;;  %v1316_v13 = vsub.f32 2.0, %v1314_v10 }
 0x73c   :  { %1321 = vst [vmem:[#allocation2] sm:$0xff] %v1319_v11  ;;  %v1318_v14 = vmul.f32 %v2161_v8, %v1316_v13 }
 0x73e   :  { %v1320_v15 = vmul.f32 %v2157_v4, %v1318_v14 }
 0x740   :  { %1322 = vst [vmem:[#allocation2 + $0x8] sm:$0xff] %v1320_v15 }
 0x741   :  { %2173 = shalt.err (!%p2170_p4)
}
 0x742   :  { %s2174_s19 = scalar_lea.hbm %s2938_s9, 256 }
 0x743   :  { %p2175_p5 = scmp.ne.s32.totalorder %s2938_s9, %s2174_s19  ;;  %p2178_p6 = scmp.lt.u32.totalorder %s2174_s19, %s2938_s9 }
 0x745   :  { %p2180_p7 = pnand %p2178_p6, %p2175_p5 }
 0x747   :  { %2183 = shalt.err (!%p2180_p7)
}
 0x748   :  { %s2190_s0 = smov 128   ;;  %s2191_s23 = smov 8  }
 0x749   :  { %1334 = dma.vmem_to_hbm [thread:$0]  %s1329_s8, 256, %s2938_s9, [#allocation3], %s2190_s0, %s2190_s0, %s2191_s23  }
 0x74a   :  { %2184 = dma.done.wait [#allocation3], 256  }
 0x74b   :  { %2185 = vsyncadd [#allocation3], 4294967040 }
 0x74c   :  { %1338 = vsyncpa [#allocation3], 1 }

</bundles_post_ra>
